<compile_context>
chip_gen: v6e
topology: v6e:2x2x1
jax: 0.10.0
libtpu: 0.0.40
codegen_flags: <defaults>
</compile_context>

<pallas_src>
import functools
import math

import jax
import jax.numpy as jnp
from jax import lax
from jax.experimental import pallas as pl
from jax.experimental.pallas import tpu as pltpu


def dmha_kernel(x_ref, wqk_ref, bqk_ref, wvq_ref, bvq_ref, vkeyst_ref,
                vembed_ref, wout_ref, bout_ref, mask_ref, o_ref,
                q_s, k_s, v_s, acc_s,
                *, num_heads, head_dim, num_v, block_q, compute_dtype):
    h = pl.program_id(1)
    blk_b, S, D = x_ref.shape
    R = blk_b * S
    Hd = head_dim

    # ---- head step 0 (once per batch block): fused Q|K projection + top-1
    #      value selection, stashed in scratch for the remaining head steps.
    @pl.when(h == 0)
    def _init():
        xf = x_ref[...].reshape(R, D)                        # (R, D) f32
        xc = xf.astype(compute_dtype)

        # Fused lane-dense Q|K projection (scale already folded into Q half).
        qk = jnp.dot(xc, wqk_ref[...],
                     preferred_element_type=jnp.float32) + bqk_ref[...]
        qk = qk.astype(compute_dtype)                        # (R, 2D)

        # compute_value_states: top-1 value selection. vq/sim kept in f32 so
        # the argmax matches the reference; onehot@table uses bf16 MXU inputs.
        vq = jnp.dot(xf, wvq_ref[...],
                     preferred_element_type=jnp.float32) + bvq_ref[...]
        sim = jnp.dot(vq, vkeyst_ref[...],
                      preferred_element_type=jnp.float32)    # (R, num_v)
        col = lax.broadcasted_iota(jnp.int32, sim.shape, 1)
        row_max = jnp.max(sim, axis=-1, keepdims=True)
        # torch.topk(1): first index attaining the max.
        first = jnp.min(jnp.where(sim == row_max, col, num_v),
                        axis=-1, keepdims=True)
        onehot = (col == first).astype(compute_dtype)        # exact in bf16
        vemb = jnp.dot(onehot, vembed_ref[...],
                       preferred_element_type=jnp.float32)   # (R, D)
        v = (xf * vemb).astype(compute_dtype)                # (R, D)

        # Stash per-head slices with the head index on the leading (untiled)
        # scratch axis: static lane slices here, dynamic dim-0 reads later.
        for hh in range(num_heads):
            q_s[hh] = qk[:, hh * Hd:(hh + 1) * Hd].reshape(blk_b, S, Hd)
            k_s[hh] = qk[:, D + hh * Hd:D + (hh + 1) * Hd].reshape(blk_b, S, Hd)
            v_s[hh] = v[:, hh * Hd:(hh + 1) * Hd].reshape(blk_b, S, Hd)
        acc_s[...] = jnp.zeros_like(acc_s)

    # ---- one head per grid step: causal attention + fused out-proj slice.
    qh = q_s[h]                                              # (blk_b, S, Hd)
    kh = k_s[h]
    vh = v_s[h]
    w_out_h = wout_ref[0]                                    # (Hd, D) bf16

    for qb in range(S // block_q):
        q0 = qb * block_q
        kv = q0 + block_q                                    # causal KV extent
        qblk = qh[:, q0:q0 + block_q, :]
        s = jnp.einsum("bqd,bkd->bqk", qblk, kh[:, :kv, :],
                       preferred_element_type=jnp.float32)   # (blk_b, TQ, kv)
        # band mask: zeros over fully-visible keys, -1e30 strict upper triangle
        # on the trailing TQ x TQ diagonal block (precomputed, sliced from the
        # right end so the same (TQ, S) band works for every query block).
        s = s + mask_ref[:, S - kv:][None, :, :]
        m = jnp.max(s, axis=-1, keepdims=True)
        e = jnp.exp(s - m)
        denom = jnp.sum(e, axis=-1, keepdims=True)           # (blk_b, TQ, 1)
        # deferred normalization: P@V on unnormalized exp, rescale afterwards.
        y = jnp.einsum("bqk,bkd->bqd", e.astype(compute_dtype), vh[:, :kv, :],
                       preferred_element_type=jnp.float32)   # (blk_b, TQ, Hd)
        y = y * pl.reciprocal(denom, approx=True)
        yf = y.reshape(blk_b * block_q, Hd).astype(compute_dtype)
        contrib = jnp.dot(yf, w_out_h,
                          preferred_element_type=jnp.float32)  # (blk_b*TQ, D)
        acc_s[:, q0:q0 + block_q, :] = (
            acc_s[:, q0:q0 + block_q, :] + contrib.reshape(blk_b, block_q, D))

    # ---- last head: add output-projection bias and store.
    @pl.when(h == num_heads - 1)
    def _finalize():
        o_ref[...] = (acc_s[...] + bout_ref[...]).astype(o_ref.dtype)


def _vmem_estimate(bb, S, D, H, out_isz, TQ, in_isz=4):
    """Rough per-grid-step VMEM footprint (bytes); used to size block_b."""
    Hd = D // H
    R = bb * S
    n_qb = max(1, S // TQ)
    io = 2 * bb * S * D * in_isz + 2 * bb * S * D * out_isz      # dbl-buffered x / out
    scratch = 3 * H * bb * S * Hd * 2 + bb * S * D * 4           # q/k/v stash + f32 acc
    weights = (2 * (D * 2 * D * 2) + D * Hd * 4 + 2 * (Hd * D * 2)
               + 4 * TQ * S + 16 * D)                            # wqk(x2), wvq, wout, mask, misc
    init = R * 2 * D * (4 + 2) + 4 * R * D * 4                   # head-0 transients
    # attention transients: pessimistically assume the statically-unrolled
    # query-block loop keeps the causal half of score/exp tensors live.
    attn = bb * (S * S * (n_qb + 1) // (2 * n_qb)) * 4 * 2 + bb * S * Hd * 4
    return io + scratch + weights + max(init, attn)


def _pick_block_b(B, S, D, H, out_isz, TQ, max_block=8, budget=36 * 2 ** 20):
    # Keep the 'parallel' batch axis at >= 2 grid steps when possible so both
    # v7x TensorCores get work; then take the largest divisor fitting VMEM.
    cap = 1 if B == 1 else max(1, min(max_block, B // 2))
    for d in range(cap, 0, -1):
        if B % d == 0 and _vmem_estimate(d, S, D, H, out_isz, TQ) <= budget:
            return d
    return 1


def dmha_forward(x, params, *, num_heads, num_v, block_b=None, block_q=None,
                 compute_dtype=jnp.bfloat16):
    B, S, D = x.shape
    assert D % num_heads == 0
    Hd = D // num_heads
    scale = 1.0 / math.sqrt(Hd)
    cdt = compute_dtype

    if block_q is None:
        block_q = 128 if (S % 128 == 0 and S > 128) else S
    assert S % block_q == 0, "seq_len must be divisible by block_q"

    out_isz = jnp.dtype(x.dtype).itemsize
    if block_b is None:
        block_b = _pick_block_b(B, S, D, num_heads, out_isz, block_q)
    assert B % block_b == 0, "batch must be divisible by block_b"

    # Host-side weight preparation:
    #  * fuse Q and K projections into one lane-dense (D, 2D) weight and fold
    #    the 1/sqrt(head_dim) softmax scale into the Q half,
    #  * pre-transpose V_keys, split W_out per head,
    #  * cast MXU weights to the compute dtype (value-query path stays f32 so
    #    the top-1 selection matches the reference).
    wqk = jnp.concatenate([params["wq"] * scale, params["wk"]], axis=1).astype(cdt)
    bqk = jnp.concatenate([params["bq"][0:1] * scale, params["bk"][0:1]],
                          axis=1).astype(jnp.float32)              # (1, 2D)
    wvq = params["wvq"].astype(jnp.float32)                        # (D, Hd)
    bvq = params["bvq"].astype(jnp.float32)                        # (1, Hd)
    vkeys_t = params["vkeys"].T.astype(jnp.float32)                # (Hd, num_v)
    vembed = params["vembed"].astype(cdt)                          # (num_v, D)
    wout_h = params["wout"].reshape(num_heads, Hd, D).astype(cdt)  # (H, Hd, D)
    bout = params["bout"].astype(jnp.float32)                      # (1, D)

    # Causal band mask (block_q, S): zeros except a -1e30 strict upper triangle
    # in the last block_q columns; query block qb uses the last (q0+TQ) cols.
    tri = jnp.where(jnp.triu(jnp.ones((block_q, block_q), bool), 1),
                    jnp.float32(-1e30), jnp.float32(0.0))
    if S == block_q:
        band = tri
    else:
        band = jnp.concatenate(
            [jnp.zeros((block_q, S - block_q), jnp.float32), tri], axis=1)

    kernel = functools.partial(dmha_kernel, num_heads=num_heads, head_dim=Hd,
                               num_v=num_v, block_q=block_q, compute_dtype=cdt)

    c2 = lambda b, h: (0, 0)
    in_specs = [
        pl.BlockSpec((block_b, S, D), lambda b, h: (b, 0, 0)),  # x (resident over heads)
        pl.BlockSpec((D, 2 * D), c2),                           # fused Wq|Wk (Q scaled)
        pl.BlockSpec((1, 2 * D), c2),                           # fused bq|bk (bq scaled)
        pl.BlockSpec((D, Hd), c2),                              # W_vq (f32)
        pl.BlockSpec((1, Hd), c2),                              # b_vq
        pl.BlockSpec((Hd, num_v), c2),                          # V_keys^T
        pl.BlockSpec((num_v, D), c2),                           # V_embed table (bf16)
        pl.BlockSpec((1, Hd, D), lambda b, h: (h, 0, 0)),       # W_out slice of head h
        pl.BlockSpec((1, D), c2),                               # b_out
        pl.BlockSpec((block_q, S), c2),                         # causal band mask
    ]
    scratch_shapes = [
        pltpu.VMEM((num_heads, block_b, S, Hd), cdt),   # Q stash (head-major)
        pltpu.VMEM((num_heads, block_b, S, Hd), cdt),   # K stash
        pltpu.VMEM((num_heads, block_b, S, Hd), cdt),   # V stash
        pltpu.VMEM((block_b, S, D), jnp.float32),       # out-proj accumulator
    ]

    est = _vmem_estimate(block_b, S, D, num_heads, out_isz, block_q)
    vmem_limit = int(min(48 * 2 ** 20, max(32 * 2 ** 20, 2 * est)))

    return pl.pallas_call(
        kernel,
        out_shape=jax.ShapeDtypeStruct((B, S, D), x.dtype),
        grid=(B // block_b, num_heads),
        in_specs=in_specs,
        out_specs=pl.BlockSpec((block_b, S, D), lambda b, h: (b, 0, 0)),
        scratch_shapes=scratch_shapes,
        compiler_params=pltpu.CompilerParams(
            dimension_semantics=("parallel", "arbitrary"),
            vmem_limit_bytes=vmem_limit),
    )(x, wqk, bqk, wvq, bvq, vkeys_t, vembed, wout_h, bout, band)


def dmha_reference(x, p, *, num_heads, num_v):
    """Pure-JAX f32 reference mirroring the PyTorch forward pass."""
    B, S, D = x.shape
    Hd = D // num_heads
    q = x @ p["wq"] + p["bq"][0]
    k = x @ p["wk"] + p["bk"][0]
    vq = x @ p["wvq"] + p["bvq"][0]
    sim = vq @ p["vkeys"].T
    idx = jnp.argmax(sim, axis=-1)                        # topk(1) indices
    vemb = p["vembed"][idx]                               # embedding lookup
    v = x * vemb

    def heads(t):
        return t.reshape(B, S, num_heads, Hd).transpose(0, 2, 1, 3)

    Q, K, V = heads(q), heads(k), heads(v)
    s = jnp.einsum("bhqd,bhkd->bhqk", Q, K) / math.sqrt(Hd)
    mask = jnp.where(jnp.triu(jnp.ones((S, S), bool), 1),
                     jnp.finfo(x.dtype).min, 0.0)
    s = s + mask
    pw = jax.nn.softmax(s.astype(jnp.float32), axis=-1).astype(x.dtype)
    y = jnp.einsum("bhqk,bhkd->bhqd", pw, V).transpose(0, 2, 1, 3).reshape(B, S, D)
    return y @ p["wout"] + p["bout"][0]


if __name__ == "__main__":
    B, S, D = 2, 16, 32
    num_heads, num_v = 2, 4
    head_dim = D // num_heads

    key = jax.random.PRNGKey(0)
    ks = jax.random.split(key, 12)
    scale = 0.1
    params = {
        "wq":     scale * jax.random.normal(ks[0], (D, D), jnp.float32),
        "bq":     scale * jax.random.normal(ks[1], (1, D), jnp.float32),
        "wk":     scale * jax.random.normal(ks[2], (D, D), jnp.float32),
        "bk":     scale * jax.random.normal(ks[3], (1, D), jnp.float32),
        "wvq":    scale * jax.random.normal(ks[4], (D, head_dim), jnp.float32),
        "bvq":    scale * jax.random.normal(ks[5], (1, head_dim), jnp.float32),
        # module inits V_keys to zeros; random here so top-1 is non-degenerate
        "vkeys":  scale * jax.random.normal(ks[6], (num_v, head_dim), jnp.float32),
        "vembed": scale * jax.random.normal(ks[7], (num_v, D), jnp.float32),
        "wout":   scale * jax.random.normal(ks[8], (D, D), jnp.float32),
        "bout":   scale * jax.random.normal(ks[9], (1, D), jnp.float32),
    }
    x = jax.random.normal(ks[10], (B, S, D), jnp.float32)

    out = dmha_forward(x, params, num_heads=num_heads, num_v=num_v)
    out = jax.block_until_ready(out)

    ref = dmha_reference(x, params, num_heads=num_heads, num_v=num_v)
    assert out.shape == (B, S, D)
    err = float(jnp.max(jnp.abs(out - ref)))
    # bf16 MXU inputs (incl. the bf16 embedding table) + approximate softmax
    # reciprocal -> small smooth noise vs. the f32 reference; the exact-f32
    # top-1 selection keeps the structure identical.
    assert err < 2e-2, f"mismatch vs pure-JAX reference: max abs err {err}"

    print("KERNEL_OK")
</pallas_src>

<mosaic_0001>
module attributes {stable_mosaic.version = 11 : i64} {
  func.func @dmha_kernel(%arg0: i32, %arg1: i32, %arg2: memref<1x16x32xf32, #tpu.memory_space<vmem>>, %arg3: memref<32x64xbf16, #tpu.memory_space<vmem>>, %arg4: memref<1x64xf32, #tpu.memory_space<vmem>>, %arg5: memref<32x16xf32, #tpu.memory_space<vmem>>, %arg6: memref<1x16xf32, #tpu.memory_space<vmem>>, %arg7: memref<16x4xf32, #tpu.memory_space<vmem>>, %arg8: memref<4x32xbf16, #tpu.memory_space<vmem>>, %arg9: memref<1x16x32xbf16, #tpu.memory_space<vmem>>, %arg10: memref<1x32xf32, #tpu.memory_space<vmem>>, %arg11: memref<16x16xf32, #tpu.memory_space<vmem>>, %arg12: memref<1x16x32xf32, #tpu.memory_space<vmem>>, %arg13: memref<2x1x16x16xbf16, #tpu.memory_space<vmem>>, %arg14: memref<2x1x16x16xbf16, #tpu.memory_space<vmem>>, %arg15: memref<2x1x16x16xbf16, #tpu.memory_space<vmem>>, %arg16: memref<1x16x32xf32, #tpu.memory_space<vmem>>) attributes {dimension_semantics = [#tpu.dimension_semantics<parallel>, #tpu.dimension_semantics<arbitrary>], iteration_bounds = array<i64: 2, 2>, scalar_prefetch = 0 : i64, scratch_operands = 4 : i64, tpu.core_type = #tpu.core_type<tc>, window_params = [{transform_indices = @transform_0, window_bounds = array<i64: 1, 16, 32>}, {pipeline_mode = #tpu.pipeline_mode<synchronous>, transform_indices = @transform_1, window_bounds = array<i64: 32, 64>}, {pipeline_mode = #tpu.pipeline_mode<synchronous>, transform_indices = @transform_2, window_bounds = array<i64: 1, 64>}, {pipeline_mode = #tpu.pipeline_mode<synchronous>, transform_indices = @transform_3, window_bounds = array<i64: 32, 16>}, {pipeline_mode = #tpu.pipeline_mode<synchronous>, transform_indices = @transform_4, window_bounds = array<i64: 1, 16>}, {pipeline_mode = #tpu.pipeline_mode<synchronous>, transform_indices = @transform_5, window_bounds = array<i64: 16, 4>}, {pipeline_mode = #tpu.pipeline_mode<synchronous>, transform_indices = @transform_6, window_bounds = array<i64: 4, 32>}, {transform_indices = @transform_7, window_bounds = array<i64: 1, 16, 32>}, {pipeline_mode = #tpu.pipeline_mode<synchronous>, transform_indices = @transform_8, window_bounds = array<i64: 1, 32>}, {pipeline_mode = #tpu.pipeline_mode<synchronous>, transform_indices = @transform_9, window_bounds = array<i64: 16, 16>}, {transform_indices = @transform_10, window_bounds = array<i64: 1, 16, 32>}]} {
    %c0_i32 = arith.constant 0 : i32
    %0 = arith.cmpi eq, %arg1, %c0_i32 : i32
    %1 = arith.extui %0 : i1 to i32
    %c0_i32_0 = arith.constant 0 : i32
    %2 = arith.cmpi ne, %1, %c0_i32_0 : i32
    scf.if %2 {
      %c0_25 = arith.constant 0 : index
      %c0_26 = arith.constant 0 : index
      %c0_27 = arith.constant 0 : index
      %40 = vector.load %arg2[%c0_25, %c0_26, %c0_27] : memref<1x16x32xf32, #tpu.memory_space<vmem>>, vector<1x16x32xf32>
      %41 = vector.shape_cast %40 : vector<1x16x32xf32> to vector<16x32xf32>
      %42 = arith.truncf %41 : vector<16x32xf32> to vector<16x32xbf16>
      %c0_28 = arith.constant 0 : index
      %c0_29 = arith.constant 0 : index
      %43 = vector.load %arg3[%c0_28, %c0_29] : memref<32x64xbf16, #tpu.memory_space<vmem>>, vector<32x64xbf16>
      %cst_30 = arith.constant dense<0.000000e+00> : vector<16x64xf32>
      %44 = tpu.matmul %42, %43, %cst_30 {dimension_numbers = #tpu.dot_dimension_numbers<[1], [0], [0], [1], [0, 0, 1, 1], [], []>} : vector<16x32xbf16>, vector<32x64xbf16>, vector<16x64xf32> -> vector<16x64xf32>
      %c0_31 = arith.constant 0 : index
      %c0_32 = arith.constant 0 : index
      %45 = vector.load %arg4[%c0_31, %c0_32] : memref<1x64xf32, #tpu.memory_space<vmem>>, vector<1x64xf32>
      %46 = vector.broadcast %45 : vector<1x64xf32> to vector<16x64xf32>
      %47 = arith.addf %44, %46 : vector<16x64xf32>
      %48 = arith.truncf %47 : vector<16x64xf32> to vector<16x64xbf16>
      %c0_33 = arith.constant 0 : index
      %c0_34 = arith.constant 0 : index
      %49 = vector.load %arg5[%c0_33, %c0_34] : memref<32x16xf32, #tpu.memory_space<vmem>>, vector<32x16xf32>
      %cst_35 = arith.constant dense<0.000000e+00> : vector<16x16xf32>
      %50 = tpu.matmul %41, %49, %cst_35 {dimension_numbers = #tpu.dot_dimension_numbers<[1], [0], [0], [1], [0, 0, 1, 1], [], []>} : vector<16x32xf32>, vector<32x16xf32>, vector<16x16xf32> -> vector<16x16xf32>
      %c0_36 = arith.constant 0 : index
      %c0_37 = arith.constant 0 : index
      %51 = vector.load %arg6[%c0_36, %c0_37] : memref<1x16xf32, #tpu.memory_space<vmem>>, vector<1x16xf32>
      %52 = vector.broadcast %51 : vector<1x16xf32> to vector<16x16xf32>
      %53 = arith.addf %50, %52 : vector<16x16xf32>
      %c0_38 = arith.constant 0 : index
      %c0_39 = arith.constant 0 : index
      %54 = vector.load %arg7[%c0_38, %c0_39] : memref<16x4xf32, #tpu.memory_space<vmem>>, vector<16x4xf32>
      %cst_40 = arith.constant dense<0.000000e+00> : vector<16x4xf32>
      %55 = tpu.matmul %53, %54, %cst_40 {dimension_numbers = #tpu.dot_dimension_numbers<[1], [0], [0], [1], [0, 0, 1, 1], [], []>} : vector<16x16xf32>, vector<16x4xf32>, vector<16x4xf32> -> vector<16x4xf32>
      %56 = tpu.iota {dimensions = array<i32: 1>} : vector<16x4xi32>
      %cst_41 = arith.constant dense<0xFF800000> : vector<16xf32>
      %57 = vector.multi_reduction <maximumf>, %55, %cst_41 [1] : vector<16x4xf32> to vector<16xf32>
      %58 = vector.shape_cast %57 : vector<16xf32> to vector<16x1xf32>
      %59 = vector.broadcast %58 : vector<16x1xf32> to vector<16x4xf32>
      %60 = arith.cmpf oeq, %55, %59 : vector<16x4xf32>
      %c4_i32 = arith.constant 4 : i32
      %61 = vector.broadcast %c4_i32 : i32 to vector<16x4xi32>
      %62 = arith.select %60, %56, %61 : vector<16x4xi1>, vector<16x4xi32>
      %cst_42 = arith.constant dense<2147483647> : vector<16xi32>
      %63 = vector.multi_reduction <minsi>, %62, %cst_42 [1] : vector<16x4xi32> to vector<16xi32>
      %64 = vector.shape_cast %63 : vector<16xi32> to vector<16x1xi32>
      %65 = vector.broadcast %64 : vector<16x1xi32> to vector<16x4xi32>
      %66 = arith.cmpi eq, %56, %65 : vector<16x4xi32>
      %67 = arith.extui %66 : vector<16x4xi1> to vector<16x4xi32>
      %68 = arith.sitofp %67 : vector<16x4xi32> to vector<16x4xf32>
      %69 = arith.truncf %68 : vector<16x4xf32> to vector<16x4xbf16>
      %c0_43 = arith.constant 0 : index
      %c0_44 = arith.constant 0 : index
      %70 = vector.load %arg8[%c0_43, %c0_44] : memref<4x32xbf16, #tpu.memory_space<vmem>>, vector<4x32xbf16>
      %cst_45 = arith.constant dense<0.000000e+00> : vector<16x32xf32>
      %71 = tpu.matmul %69, %70, %cst_45 {dimension_numbers = #tpu.dot_dimension_numbers<[1], [0], [0], [1], [0, 0, 1, 1], [], []>} : vector<16x4xbf16>, vector<4x32xbf16>, vector<16x32xf32> -> vector<16x32xf32>
      %72 = arith.mulf %41, %71 : vector<16x32xf32>
      %73 = arith.truncf %72 : vector<16x32xf32> to vector<16x32xbf16>
      %74 = vector.extract_strided_slice %48 {offsets = [0, 0], sizes = [16, 16], strides = [1, 1]} : vector<16x64xbf16> to vector<16x16xbf16>
      %75 = vector.shape_cast %74 : vector<16x16xbf16> to vector<1x16x16xbf16>
      %c0_46 = arith.constant 0 : index
      %c0_47 = arith.constant 0 : index
      %c0_48 = arith.constant 0 : index
      %c0_49 = arith.constant 0 : index
      %76 = vector.load %arg13[%c0_46, %c0_47, %c0_48, %c0_49] : memref<2x1x16x16xbf16, #tpu.memory_space<vmem>>, vector<1x1x16x16xbf16>
      %77 = vector.shape_cast %76 : vector<1x1x16x16xbf16> to vector<1x16x16xbf16>
      %78 = vector.shape_cast %75 : vector<1x16x16xbf16> to vector<1x1x16x16xbf16>
      tpu.vector_store %arg13[%c0_46, %c0_47, %c0_48, %c0_49], %78 {strides = array<i32>} : memref<2x1x16x16xbf16, #tpu.memory_space<vmem>>, vector<1x1x16x16xbf16>,
      %79 = vector.extract_strided_slice %48 {offsets = [0, 32], sizes = [16, 16], strides = [1, 1]} : vector<16x64xbf16> to vector<16x16xbf16>
      %80 = vector.shape_cast %79 : vector<16x16xbf16> to vector<1x16x16xbf16>
      %c0_50 = arith.constant 0 : index
      %c0_51 = arith.constant 0 : index
      %c0_52 = arith.constant 0 : index
      %c0_53 = arith.constant 0 : index
      %81 = vector.load %arg14[%c0_50, %c0_51, %c0_52, %c0_53] : memref<2x1x16x16xbf16, #tpu.memory_space<vmem>>, vector<1x1x16x16xbf16>
      %82 = vector.shape_cast %81 : vector<1x1x16x16xbf16> to vector<1x16x16xbf16>
      %83 = vector.shape_cast %80 : vector<1x16x16xbf16> to vector<1x1x16x16xbf16>
      tpu.vector_store %arg14[%c0_50, %c0_51, %c0_52, %c0_53], %83 {strides = array<i32>} : memref<2x1x16x16xbf16, #tpu.memory_space<vmem>>, vector<1x1x16x16xbf16>,
      %84 = vector.extract_strided_slice %73 {offsets = [0, 0], sizes = [16, 16], strides = [1, 1]} : vector<16x32xbf16> to vector<16x16xbf16>
      %85 = vector.shape_cast %84 : vector<16x16xbf16> to vector<1x16x16xbf16>
      %c0_54 = arith.constant 0 : index
      %c0_55 = arith.constant 0 : index
      %c0_56 = arith.constant 0 : index
      %c0_57 = arith.constant 0 : index
      %86 = vector.load %arg15[%c0_54, %c0_55, %c0_56, %c0_57] : memref<2x1x16x16xbf16, #tpu.memory_space<vmem>>, vector<1x1x16x16xbf16>
      %87 = vector.shape_cast %86 : vector<1x1x16x16xbf16> to vector<1x16x16xbf16>
      %88 = vector.shape_cast %85 : vector<1x16x16xbf16> to vector<1x1x16x16xbf16>
      tpu.vector_store %arg15[%c0_54, %c0_55, %c0_56, %c0_57], %88 {strides = array<i32>} : memref<2x1x16x16xbf16, #tpu.memory_space<vmem>>, vector<1x1x16x16xbf16>,
      %89 = vector.extract_strided_slice %48 {offsets = [0, 16], sizes = [16, 16], strides = [1, 1]} : vector<16x64xbf16> to vector<16x16xbf16>
      %90 = vector.shape_cast %89 : vector<16x16xbf16> to vector<1x16x16xbf16>
      %c1 = arith.constant 1 : index
      %c0_58 = arith.constant 0 : index
      %c0_59 = arith.constant 0 : index
      %c0_60 = arith.constant 0 : index
      %91 = vector.load %arg13[%c1, %c0_58, %c0_59, %c0_60] : memref<2x1x16x16xbf16, #tpu.memory_space<vmem>>, vector<1x1x16x16xbf16>
      %92 = vector.shape_cast %91 : vector<1x1x16x16xbf16> to vector<1x16x16xbf16>
      %93 = vector.shape_cast %90 : vector<1x16x16xbf16> to vector<1x1x16x16xbf16>
      tpu.vector_store %arg13[%c1, %c0_58, %c0_59, %c0_60], %93 {strides = array<i32>} : memref<2x1x16x16xbf16, #tpu.memory_space<vmem>>, vector<1x1x16x16xbf16>,
      %94 = vector.extract_strided_slice %48 {offsets = [0, 48], sizes = [16, 16], strides = [1, 1]} : vector<16x64xbf16> to vector<16x16xbf16>
      %95 = vector.shape_cast %94 : vector<16x16xbf16> to vector<1x16x16xbf16>
      %c1_61 = arith.constant 1 : index
      %c0_62 = arith.constant 0 : index
      %c0_63 = arith.constant 0 : index
      %c0_64 = arith.constant 0 : index
      %96 = vector.load %arg14[%c1_61, %c0_62, %c0_63, %c0_64] : memref<2x1x16x16xbf16, #tpu.memory_space<vmem>>, vector<1x1x16x16xbf16>
      %97 = vector.shape_cast %96 : vector<1x1x16x16xbf16> to vector<1x16x16xbf16>
      %98 = vector.shape_cast %95 : vector<1x16x16xbf16> to vector<1x1x16x16xbf16>
      tpu.vector_store %arg14[%c1_61, %c0_62, %c0_63, %c0_64], %98 {strides = array<i32>} : memref<2x1x16x16xbf16, #tpu.memory_space<vmem>>, vector<1x1x16x16xbf16>,
      %99 = vector.extract_strided_slice %73 {offsets = [0, 16], sizes = [16, 16], strides = [1, 1]} : vector<16x32xbf16> to vector<16x16xbf16>
      %100 = vector.shape_cast %99 : vector<16x16xbf16> to vector<1x16x16xbf16>
      %c1_65 = arith.constant 1 : index
      %c0_66 = arith.constant 0 : index
      %c0_67 = arith.constant 0 : index
      %c0_68 = arith.constant 0 : index
      %101 = vector.load %arg15[%c1_65, %c0_66, %c0_67, %c0_68] : memref<2x1x16x16xbf16, #tpu.memory_space<vmem>>, vector<1x1x16x16xbf16>
      %102 = vector.shape_cast %101 : vector<1x1x16x16xbf16> to vector<1x16x16xbf16>
      %103 = vector.shape_cast %100 : vector<1x16x16xbf16> to vector<1x1x16x16xbf16>
      tpu.vector_store %arg15[%c1_65, %c0_66, %c0_67, %c0_68], %103 {strides = array<i32>} : memref<2x1x16x16xbf16, #tpu.memory_space<vmem>>, vector<1x1x16x16xbf16>,
      %cst_69 = arith.constant 0.000000e+00 : f32
      %104 = vector.broadcast %cst_69 : f32 to vector<1x16x32xf32>
      %c0_70 = arith.constant 0 : index
      %c0_71 = arith.constant 0 : index
      %c0_72 = arith.constant 0 : index
      %105 = vector.load %arg16[%c0_70, %c0_71, %c0_72] : memref<1x16x32xf32, #tpu.memory_space<vmem>>, vector<1x16x32xf32>
      tpu.vector_store %arg16[%c0_70, %c0_71, %c0_72], %104 {strides = array<i32>} : memref<1x16x32xf32, #tpu.memory_space<vmem>>, vector<1x16x32xf32>,
    } else {
    }
    %3 = arith.index_cast %arg1 : i32 to index
    %c0 = arith.constant 0 : index
    %c0_1 = arith.constant 0 : index
    %c0_2 = arith.constant 0 : index
    %4 = vector.load %arg13[%3, %c0, %c0_1, %c0_2] : memref<2x1x16x16xbf16, #tpu.memory_space<vmem>>, vector<1x1x16x16xbf16>
    %5 = vector.shape_cast %4 : vector<1x1x16x16xbf16> to vector<1x16x16xbf16>
    %6 = arith.index_cast %arg1 : i32 to index
    %c0_3 = arith.constant 0 : index
    %c0_4 = arith.constant 0 : index
    %c0_5 = arith.constant 0 : index
    %7 = vector.load %arg14[%6, %c0_3, %c0_4, %c0_5] : memref<2x1x16x16xbf16, #tpu.memory_space<vmem>>, vector<1x1x16x16xbf16>
    %8 = vector.shape_cast %7 : vector<1x1x16x16xbf16> to vector<1x16x16xbf16>
    %9 = arith.index_cast %arg1 : i32 to index
    %c0_6 = arith.constant 0 : index
    %c0_7 = arith.constant 0 : index
    %c0_8 = arith.constant 0 : index
    %10 = vector.load %arg15[%9, %c0_6, %c0_7, %c0_8] : memref<2x1x16x16xbf16, #tpu.memory_space<vmem>>, vector<1x1x16x16xbf16>
    %11 = vector.shape_cast %10 : vector<1x1x16x16xbf16> to vector<1x16x16xbf16>
    %c0_9 = arith.constant 0 : index
    %c0_10 = arith.constant 0 : index
    %c0_11 = arith.constant 0 : index
    %12 = vector.load %arg9[%c0_9, %c0_10, %c0_11] : memref<1x16x32xbf16, #tpu.memory_space<vmem>>, vector<1x16x32xbf16>
    %13 = vector.shape_cast %12 : vector<1x16x32xbf16> to vector<16x32xbf16>
    "tpu.trace_start"() <{level = 10 : i32, message = "bqd,bkd->bqk"}> : () -> ()
    %cst = arith.constant dense<0.000000e+00> : vector<1x16x16xf32>
    %14 = tpu.matmul %5, %8, %cst {dimension_numbers = #tpu.dot_dimension_numbers<[2], [2], [1], [1], [0, 0, 0, 1, 1, 1], [0], [0]>} : vector<1x16x16xbf16>, vector<1x16x16xbf16>, vector<1x16x16xf32> -> vector<1x16x16xf32>
    "tpu.trace_stop"() : () -> ()
    %c0_12 = arith.constant 0 : index
    %c0_13 = arith.constant 0 : index
    %15 = vector.load %arg11[%c0_12, %c0_13] : memref<16x16xf32, #tpu.memory_space<vmem>>, vector<16x16xf32>
    %16 = vector.shape_cast %15 : vector<16x16xf32> to vector<1x16x16xf32>
    %17 = arith.addf %14, %16 : vector<1x16x16xf32>
    %cst_14 = arith.constant dense<0xFF800000> : vector<1x16xf32>
    %18 = vector.multi_reduction <maximumf>, %17, %cst_14 [2] : vector<1x16x16xf32> to vector<1x16xf32>
    %19 = vector.shape_cast %18 : vector<1x16xf32> to vector<1x16x1xf32>
    %20 = vector.broadcast %19 : vector<1x16x1xf32> to vector<1x16x16xf32>
    %21 = arith.subf %17, %20 : vector<1x16x16xf32>
    %22 = math.exp %21 : vector<1x16x16xf32>
    %cst_15 = arith.constant dense<0.000000e+00> : vector<1x16xf32>
    %23 = vector.multi_reduction <add>, %22, %cst_15 [2] : vector<1x16x16xf32> to vector<1x16xf32>
    %24 = vector.shape_cast %23 : vector<1x16xf32> to vector<1x16x1xf32>
    %25 = arith.truncf %22 : vector<1x16x16xf32> to vector<1x16x16xbf16>
    "tpu.trace_start"() <{level = 10 : i32, message = "bqk,bkd->bqd"}> : () -> ()
    %cst_16 = arith.constant dense<0.000000e+00> : vector<1x16x16xf32>
    %26 = tpu.matmul %25, %11, %cst_16 {dimension_numbers = #tpu.dot_dimension_numbers<[2], [1], [1], [2], [0, 0, 0, 1, 1, 2], [0], [0]>} : vector<1x16x16xbf16>, vector<1x16x16xbf16>, vector<1x16x16xf32> -> vector<1x16x16xf32>
    "tpu.trace_stop"() : () -> ()
    %27 = tpu.reciprocal %24 {approx = true} : vector<1x16x1xf32> -> vector<1x16x1xf32>
    %28 = vector.broadcast %27 : vector<1x16x1xf32> to vector<1x16x16xf32>
    %29 = arith.mulf %26, %28 : vector<1x16x16xf32>
    %30 = vector.shape_cast %29 : vector<1x16x16xf32> to vector<16x16xf32>
    %31 = arith.truncf %30 : vector<16x16xf32> to vector<16x16xbf16>
    %cst_17 = arith.constant dense<0.000000e+00> : vector<16x32xf32>
    %32 = tpu.matmul %31, %13, %cst_17 {dimension_numbers = #tpu.dot_dimension_numbers<[1], [0], [0], [1], [0, 0, 1, 1], [], []>} : vector<16x16xbf16>, vector<16x32xbf16>, vector<16x32xf32> -> vector<16x32xf32>
    %c0_18 = arith.constant 0 : index
    %c0_19 = arith.constant 0 : index
    %c0_20 = arith.constant 0 : index
    %33 = vector.load %arg16[%c0_18, %c0_19, %c0_20] : memref<1x16x32xf32, #tpu.memory_space<vmem>>, vector<1x16x32xf32>
    %34 = vector.shape_cast %32 : vector<16x32xf32> to vector<1x16x32xf32>
    %35 = arith.addf %33, %34 : vector<1x16x32xf32>
    %c0_21 = arith.constant 0 : index
    %c0_22 = arith.constant 0 : index
    %c0_23 = arith.constant 0 : index
    %36 = vector.load %arg16[%c0_21, %c0_22, %c0_23] : memref<1x16x32xf32, #tpu.memory_space<vmem>>, vector<1x16x32xf32>
    tpu.vector_store %arg16[%c0_21, %c0_22, %c0_23], %35 {strides = array<i32>} : memref<1x16x32xf32, #tpu.memory_space<vmem>>, vector<1x16x32xf32>,
    %c1_i32 = arith.constant 1 : i32
    %37 = arith.cmpi eq, %arg1, %c1_i32 : i32
    %38 = arith.extui %37 : i1 to i32
    %c0_i32_24 = arith.constant 0 : i32
    %39 = arith.cmpi ne, %38, %c0_i32_24 : i32
    scf.if %39 {
      %c0_25 = arith.constant 0 : index
      %c0_26 = arith.constant 0 : index
      %c0_27 = arith.constant 0 : index
      %40 = vector.load %arg16[%c0_25, %c0_26, %c0_27] : memref<1x16x32xf32, #tpu.memory_space<vmem>>, vector<1x16x32xf32>
      %c0_28 = arith.constant 0 : index
      %c0_29 = arith.constant 0 : index
      %41 = vector.load %arg10[%c0_28, %c0_29] : memref<1x32xf32, #tpu.memory_space<vmem>>, vector<1x32xf32>
      %42 = vector.shape_cast %41 : vector<1x32xf32> to vector<1x1x32xf32>
      %43 = vector.broadcast %42 : vector<1x1x32xf32> to vector<1x16x32xf32>
      %44 = arith.addf %40, %43 : vector<1x16x32xf32>
      %c0_30 = arith.constant 0 : index
      %c0_31 = arith.constant 0 : index
      %c0_32 = arith.constant 0 : index
      %45 = vector.load %arg12[%c0_30, %c0_31, %c0_32] : memref<1x16x32xf32, #tpu.memory_space<vmem>>, vector<1x16x32xf32>
      tpu.vector_store %arg12[%c0_30, %c0_31, %c0_32], %44 {strides = array<i32>} : memref<1x16x32xf32, #tpu.memory_space<vmem>>, vector<1x16x32xf32>,
    } else {
    }
    return
  }
  func.func @transform_0(%arg0: i32, %arg1: i32) -> (i32, i32, i32) {
    %c0_i32 = arith.constant 0 : i32
    %c0_i32_0 = arith.constant 0 : i32
    %c0_i32_1 = arith.constant 0 : i32
    return %arg0, %c0_i32, %c0_i32_0 : i32, i32, i32
  }
  func.func @transform_1(%arg0: i32, %arg1: i32) -> (i32, i32) {
    %c0_i32 = arith.constant 0 : i32
    %c0_i32_0 = arith.constant 0 : i32
    %c0_i32_1 = arith.constant 0 : i32
    return %c0_i32, %c0_i32_0 : i32, i32
  }
  func.func @transform_2(%arg0: i32, %arg1: i32) -> (i32, i32) {
    %c0_i32 = arith.constant 0 : i32
    %c0_i32_0 = arith.constant 0 : i32
    %c0_i32_1 = arith.constant 0 : i32
    return %c0_i32, %c0_i32_0 : i32, i32
  }
  func.func @transform_3(%arg0: i32, %arg1: i32) -> (i32, i32) {
    %c0_i32 = arith.constant 0 : i32
    %c0_i32_0 = arith.constant 0 : i32
    %c0_i32_1 = arith.constant 0 : i32
    return %c0_i32, %c0_i32_0 : i32, i32
  }
  func.func @transform_4(%arg0: i32, %arg1: i32) -> (i32, i32) {
    %c0_i32 = arith.constant 0 : i32
    %c0_i32_0 = arith.constant 0 : i32
    %c0_i32_1 = arith.constant 0 : i32
    return %c0_i32, %c0_i32_0 : i32, i32
  }
  func.func @transform_5(%arg0: i32, %arg1: i32) -> (i32, i32) {
    %c0_i32 = arith.constant 0 : i32
    %c0_i32_0 = arith.constant 0 : i32
    %c0_i32_1 = arith.constant 0 : i32
    return %c0_i32, %c0_i32_0 : i32, i32
  }
  func.func @transform_6(%arg0: i32, %arg1: i32) -> (i32, i32) {
    %c0_i32 = arith.constant 0 : i32
    %c0_i32_0 = arith.constant 0 : i32
    %c0_i32_1 = arith.constant 0 : i32
    return %c0_i32, %c0_i32_0 : i32, i32
  }
  func.func @transform_7(%arg0: i32, %arg1: i32) -> (i32, i32, i32) {
    %c0_i32 = arith.constant 0 : i32
    %c0_i32_0 = arith.constant 0 : i32
    %c0_i32_1 = arith.constant 0 : i32
    return %arg1, %c0_i32, %c0_i32_0 : i32, i32, i32
  }
  func.func @transform_8(%arg0: i32, %arg1: i32) -> (i32, i32) {
    %c0_i32 = arith.constant 0 : i32
    %c0_i32_0 = arith.constant 0 : i32
    %c0_i32_1 = arith.constant 0 : i32
    return %c0_i32, %c0_i32_0 : i32, i32
  }
  func.func @transform_9(%arg0: i32, %arg1: i32) -> (i32, i32) {
    %c0_i32 = arith.constant 0 : i32
    %c0_i32_0 = arith.constant 0 : i32
    %c0_i32_1 = arith.constant 0 : i32
    return %c0_i32, %c0_i32_0 : i32, i32
  }
  func.func @transform_10(%arg0: i32, %arg1: i32) -> (i32, i32, i32) {
    %c0_i32 = arith.constant 0 : i32
    %c0_i32_0 = arith.constant 0 : i32
    %c0_i32_1 = arith.constant 0 : i32
    return %arg0, %c0_i32, %c0_i32_0 : i32, i32, i32
  }
}

</mosaic_0001>

<bundles_post_ra>
// kernel: tpu_custom_call.1
= control target key start
LH: loop header
LB: loop body
LE: loop exit
PB: predicated region body
PF: predicated region fallthrough
CT: control target
= control target key end

     0   :  { %s2008_s0 = inlined_call_operand.vmem [shape: f32[2,16,32], index: 0, kind: input, shape index: {}]   ;;  %s2009_s1 = inlined_call_operand.vmem [shape: bf16[32,64], index: 1, kind: input, shape index: {}]   ;;  %s2010_s2 = inlined_call_operand.hbm [shape: f32[1,64], index: 2, kind: input, shape index: {}]   ;;  %s2011_s3 = inlined_call_operand.vmem [shape: f32[32,16], index: 3, kind: input, shape index: {}]   ;;  %s2012_s4 = inlined_call_operand.hbm [shape: f32[1,16], index: 4, kind: input, shape index: {}]   ;;  %s2013_s5 = inlined_call_operand.vmem [shape: f32[16,4], index: 5, kind: input, shape index: {}]   ;;  %s2014_s6 = inlined_call_operand.hbm [shape: bf16[4,32], index: 6, kind: input, shape index: {}]   ;;  %s2015_s7 = inlined_call_operand.vmem [shape: bf16[2,16,32], index: 7, kind: input, shape index: {}]   ;;  %s2016_s8 = inlined_call_operand.vmem [shape: f32[1,32], index: 8, kind: input, shape index: {}]   ;;  %s2017_s9 = inlined_call_operand.vmem [shape: f32[16,16], index: 9, kind: input, shape index: {}]   ;;  %s2018_s10 = inlined_call_operand.hbm [shape: f32[2,16,32], index: 10, kind: output, shape index: {}]  }
   0x1   :  { %2028 = sst [smem:[#allocation22_spill]] %s2010_s2 }
   0x2   :  { %2029 = sst [smem:[#allocation23_spill]] %s2012_s4 }
   0x3   :  { %15 = vsyncpa [#allocation7], 0 }
   0x4   :  { %16 = vsyncpa [#allocation10], 0 }
   0x5   :  { %17 = vsyncpa [#allocation8], 0 }
   0x6   :  { %19 = vsyncpa [#allocation8 + $0x1], 0  ;;  %s1703_s13 = smov 0   ;;  %s1705_s14 = smov 0  }
   0x7   :  { %s1707_s15 = smov 0   ;;  %s1709_s16 = smov 0  }
   0x8   :  { %s1711_s17 = smov 0   ;;  %s1713_s18 = smov 0  }
   0x9   :  { %s1715_s19 = smov 0   ;;  %s1717_s20 = smov 0  }
   0xa LB: > { %2030 = sst [smem:[#allocation16_spill]] %s1613_s15  ;;  %s1198_s21 = sadd.s32 4294967295, %s1633_s20   ;;  %s1633_s20 = sphi %s1717_s20, %s25_s20   ;;  %s1629_s19 = sphi %s1715_s19, %s2056_s19   ;;  %s1625_s18 = sphi %s1713_s18, %s2052_s18   ;;  %s1621_s17 = sphi %s1711_s17, %s2051_s17   ;;  %s1617_s16 = sphi %s1709_s16, %s2050_s16   ;;  %s1613_s15 = sphi %s1707_s15, %s2049_s15   ;;  %s1609_s14 = sphi %s1705_s14, %s2055_s14   ;;  %s1605_s13 = sphi %s1703_s13, %s2054_s13  }
   0xb   : > { %2031 = sst [smem:[#allocation17_spill]] %s1625_s18  ;;  %s1199_s22 = sadd.s32 4294967294, %s1633_s20  }
   0xc   : > { %2032 = sst [smem:[#allocation18_spill]] %s1629_s19  ;;  %s34_s23 = sadd.s32 1, %s1625_s18 }
   0xd   : > { %s37_s24 = sadd.s32 1, %s1629_s19  ;;  %p35_p0 = scmp.ge.s32.totalorder %s34_s23, 2 }
   0xe   : > { %s264_s25 = sadd.s32 1, %s1613_s15  ;;  %p274_p1 = scmp.ne.s32.totalorder %s1613_s15, %s1609_s14 }
   0xf   : > { %p275_p2 = scmp.eq.s32.totalorder %s1198_s21, 3  ;;  %s2058_s23 = smov (%p35_p0, %s34_s23), 0 }
  0x10   : > { %2033 = sst [smem:[#allocation19_spill]] %s2058_s23  ;;  %s2060_s24 = smov (!%p35_p0, %s37_s24), %s1629_s19 }
  0x11   : > { %p1753_p3 = por %p275_p2, %p274_p1  ;;  %p280_p4 = scmp.ne.s32.totalorder %s1609_s14, %s1605_s13 }
  0x12   : > { %p39_p5 = scmp.ge.s32.totalorder %s2060_s24, 2  ;;  %p281_p6 = scmp.eq.s32.totalorder %s1199_s22, 3 }
  0x13   : > { %s2034_s26 = scalar_select %p1753_p3, 1, 0 }
  0x14   : > { %p1200_p7 = scmp.ge.s32.totalorder %s1633_s20, 1  ;;  %p288_p8 = scmp.lt.s32.totalorder %s1633_s20, 5 }
  0x15   : > { %s2062_s24 = smov (%p39_p5, %s2060_s24), 0  ;;  %p1763_p9 = por %p281_p6, %p280_p4 }
  0x16   : > { %2035 = sst [smem:[#allocation20_spill]] %s2062_s24  ;;  %p1767_p10 = pnand %p1200_p7, %p288_p8 }
  0x17   : > { %s2036_s27 = scalar_select %p1763_p9, 1, 0 }
  0x18   : > { %s2037_s28 = scalar_select %p1767_p10, 1, 0 }
  0x19   : > { %s261_s29 = ssub.s32 %s1629_s19, %s2062_s24  ;;  %p1344_p12 = pneg %p1767_p10 }
  0x1a   : > { %p262_p11 = scmp.eq.s32.totalorder %s261_s29, 0  ;;  %p1775_p13 = scmp.eq.s32.totalorder %s1198_s21, 0 }
  0x1b   : > { %s1635_s22 = smov [#allocation9]  }
  0x1c   : > { %s2038_s30 = scalar_select %p1775_p13, 1, 0 }
  0x1d   : > { %s1780_s11 = scalar_select %p262_p11, %s1613_s15, %s264_s25  }
  0x1e   : > { %p1784_p0 = pnand %p1775_p13, %p1344_p12  ;;  %s318_s23 = sshll.u32 %s1635_s22, 4  ;;  %s319_s23 = int_to_ptr.vmem [resolvable:$true] %s318_s23 }
  0x1f   : > { %2039 = sst [smem:[#allocation21_spill]] %s1780_s11  ;;  %s1466_s29 = scalar_lea.vmem %s319_s23, 16 }
  0x20   : > { %p1457_p1 = pneg %p1784_p0  ;;  %p1467_p2 = scmp.ne.s32.totalorder %s319_s23, %s1466_s29 }
  0x21   : > { %s1473_s21 = scalar_lea.vmem %s319_s23, 32  ;;  %p1474_p6 = scmp.lt.s32.totalorder %s319_s23, %s319_s23 }
  0x22   : > { %p1469_p4 = pnand %p1467_p2, %p1457_p1  ;;  %p1475_p7 = scmp.lt.s32.totalorder %s1473_s21, %s1466_s29 }
  0x24   : > { %p1470_p5 = pneg %p1469_p4  ;;  %p1476_p8 = por %p1475_p7, %p1474_p6 }
  0x26   : > { %p1477_p11 = pnand %p1476_p8, %p1470_p5 }
  0x28   : > { %1480 = shalt.err (!%p1477_p11)
}
  0x29   : > { %s2041_s4 = sld [smem:[#allocation23_spill]]  ;;  %s1636_s22 = smov [#allocation6]  }
  0x2a   : > { %s304_s19 = sshll.u32 %s1636_s22, 4  ;;  %s1637_s18 = smov [#allocation11]   ;;  %s305_s19 = int_to_ptr.vmem [resolvable:$true] %s304_s19 }
  0x2b   : > { %s332_s11 = sshll.u32 %s1637_s18, 4  ;;  %s1492_s15 = scalar_lea.vmem %s305_s19, 16  ;;  %s333_s11 = int_to_ptr.vmem [resolvable:$true] %s332_s11 }
  0x2c   : > { %p1493_p12 = scmp.ne.s32.totalorder %s305_s19, %s1492_s15  ;;  %s1499_s29 = scalar_lea.vmem %s305_s19, 32 }
  0x2d   : > { %p1500_p5 = scmp.lt.s32.totalorder %s305_s19, %s305_s19  ;;  %p1501_p6 = scmp.lt.s32.totalorder %s1499_s29, %s1492_s15 }
  0x2e   : > { %p1495_p2 = pnand %p1493_p12, %p1457_p1 }
  0x2f   : > { %1350 = dma.hbm_to_vmem [thread:$0]  (!%p1784_p0), %s2041_s4, 16, %s319_s23, [#allocation10]  }
  0x30   : > { %p1496_p4 = pneg %p1495_p2  ;;  %p1502_p7 = por %p1501_p6, %p1500_p5 }
  0x32   : > { %p1503_p8 = pnand %p1502_p7, %p1496_p4 }
  0x34   : > { %1506 = shalt.err (!%p1503_p8)
}
  0x35   : > { %s2042_s2 = sld [smem:[#allocation22_spill]]  ;;  %s1518_s18 = scalar_lea.vmem %s333_s11, 32 }
  0x36   : > { %p1519_p11 = scmp.ne.s32.totalorder %s333_s11, %s1518_s18  ;;  %p1526_p2 = scmp.lt.s32.totalorder %s333_s11, %s333_s11 }
  0x37   : > { %p1527_p3 = scmp.lt.s32.totalorder %s1518_s18, %s1518_s18 }
  0x38   : > { %p1521_p9 = pnand %p1519_p11, %p1457_p1 }
  0x39   : > { %p1528_p13 = por %p1527_p3, %p1526_p2 }
  0x3a   : > { %p1522_p12 = pneg %p1521_p9 }
  0x3b   : > { %1347 = dma.hbm_to_vmem [thread:$0]  (!%p1784_p0), %s2042_s2, 16, %s305_s19, [#allocation7]  }
  0x3c   : > { %p1529_p10 = pnand %p1528_p13, %p1522_p12 }
  0x3e   : > { %1532 = shalt.err (!%p1529_p10)
}
  0x3f   : > { %1353 = dma.hbm_to_vmem [thread:$0]  (!%p1784_p0), %s2014_s6, 32, %s333_s11, [#allocation10]  }
  0x40   : > { %p2043_p4 = scmp.ne.s32.totalorder %s2037_s28, 0 }
  0x41   : > { %p2044_p5 = scmp.ne.s32.totalorder (!%p2043_p4), %s2038_s30, 0 }
  0x42   : > { %367 = sbr.rel (%p2043_p4) target bundleno = 2048 (0x800), region = 60 }
  0x47   : > { %1592 = dma.done.wait (%p2044_p5), [#allocation7], 16  }
  0x48   : > { %1594 = vsyncadd (%p2044_p5), [#allocation7], 4294967280 }
  0x49   : > { %1596 = dma.done.wait (%p2044_p5), [#allocation10], 48  }
  0x4a   : > { %1598 = vsyncadd (%p2044_p5), [#allocation10], 4294967248  ;;  %s2027_s19 = sand.u32 1, %s1609_s14   ;;  %p418_p3 = scmp.lt.s32.totalorder %s1621_s17, 1 }
  0x4b   : > { %s1209_s28 = sshll.u32 %s2027_s19, 4  ;;  %p423_p9 = scmp.lt.s32.totalorder %s1617_s16, 1 }
  0x4c   : > { %s419_s11 = scalar_select %p418_p3, %s1621_s17, 1 }
  0x4d   : > { %s424_s12 = scalar_select %p423_p9, %s1617_s16, 1 }
  0x4e   : > { %s1249_s25 = sshll.u32 %s419_s11, 4  ;;  %s1839_s21 = scalar_lea.vmem [#allocation12], %s1209_s28 }
  0x4f   : > { %s422_s23 = scalar_lea.vmem %s2008_s0, %s1249_s25  ;;  %s1250_s30 = sshll.u32 %s424_s12, 3 }
  0x50   : > { %s1837_s15 = scalar_lea.vmem %s2015_s7, %s1250_s30  ;;  %p1214_p10 = scmp.ne.s32.totalorder %s1617_s16, 0 }
  0x51   : > { %s1640_s11 = smov (!%p1214_p10), 96   ;;  %s1641_s12 = smov (!%p1214_p10), 80  }
  0x52   : > { %432 = sbr.rel (%p1214_p10) target bundleno = 1242 (0x4da), region = 76  ;;  %s1642_s25 = smov (!%p1214_p10), 112  }
  0x57   : > { %v508_v0 = vld [vmem:[%s2011_s3 + $0x18] sm:$0xff]  ;;  %v507_v1 = vld [vmem:[%s2011_s3 + $0x10] sm:$0xff]  ;;  %vm459_vm0 = vcmask 261120   ;;  %v506_v2 = vld [vmem:[%s2011_s3 + $0x8] sm:$0xff]  ;;  %v1638_v4 = vmov 0.0   ;;  %vm599_vm1 = vcmask 130048   ;;  %v681_v18 = vlaneseq }
  0x58   : > { %1288 = vmatprep.subr.mxu1 %v508_v0  ;;  %v1851_v3 = vld [vmem:[%s422_s23] sm:$0xff]  ;;  %837 = vst.msk [vmem:[#allocation5] sm:$0xff] %vm459_vm0, %v1638_v4  ;;  %838 = vst.msk [vmem:[#allocation5 + $0x8] sm:$0xff] %vm459_vm0, %v1638_v4  ;;  %1280 = vmatprep.subr.bf16.mxu0 %v1638_v4  ;;  %v1863_v6 = vld [vmem:[%s422_s23 + $0x8] sm:$0xff]  ;;  %vm683_vm2 = vcmask 31744   ;;  %vm1639_vm5 = vmmov 0  }
  0x59   : > { %1289 = vmatpush3.msra.mxu1 %v508_v0  ;;  %1296 = vmatprep.mubr.msk.f32.mxu1 %vm459_vm0, %v1851_v3  ;;  %v505_v5 = vld [vmem:[%s2011_s3] sm:$0xff]  ;;  %v598_v7 = vld [vmem:[%s2013_s5 + $0x8] sm:$0xff]  ;;  %v1875_v19 = vand.u32 127, %v681_v18  ;;  %v435_v32 = vpack.c.bf16 %v1863_v6, %v1851_v3  ;;  %vm735_vm8 = vcmask 1041408   ;;  %vm790_vm9 = vcmask 125952  }
  0x5a   : > { %1290 = vmatprep.subr.mxu1 %v507_v1  ;;  %v597_v8 = vld [vmem:[%s2013_s5] sm:$0xff]  ;;  %v1441_v30 = vld [vmem:[%s2009_s1 + $0x8] sm:$0xff]   ;;  %1284 = vmatprep.mubr.msk.bf16.mxu0 %vm1639_vm5, %v1638_v4 }
  0x5b   : > { %1291 = vmatpush3.msra.mxu1 %v507_v1  ;;  %v1219_v10 = vld [vmem:[#allocation9] ss:$0 sm:$0xff]  ;;  %1281 = vmatpush3.bf16.msra.mxu0 %v1441_v30  ;;  %v731_v41 = vld [vmem:[#allocation11] sm:$0x3]  ;;  %v1215_v43 = vld [vmem:[#allocation6] ss:$0 sm:$0xff] }
  0x5c   : > { %1292 = vmatprep.subr.mxu1 %v506_v2  ;;  %v1442_v31 = vld [vmem:[%s2009_s1] sm:$0xff]   ;;  %1282 = vmatprep.subr.bf16.mxu0 %v1638_v4  ;;  %v737_v42 = vsel %vm735_vm8, %v731_v41, 0 }
  0x5d   : > { %1293 = vmatpush3.msra.mxu1 %v506_v2 }
  0x5e   : > { %1294 = vmatprep.subr.mxu1 %v505_v5 }
  0x5f   : > { %1295 = vmatpush3.msra.mxu1 %v505_v5  ;;  %1283 = vmatpush3.bf16.msra.mxu0 %v1442_v31 }
  0x60   : > { %1297 = vmatmul.mubr.msk.f32.vlgmr.msra.gmra.mxu1 %vm459_vm0, %v1863_v6  ;;  %1299 = vmatprep.subr.mxu1 %v598_v7 }
  0x61   : > { %1300 = vmatpush3.msra.mxu1 %v598_v7  ;;  %1306 = vmatprep.subr.bf16.mxu0 %v1638_v4 }
  0x62   : > { %1301 = vmatprep.subr.mxu1 %v597_v8  ;;  %1285 = vmatmul.mubr.msk.bf16.vlgmr.msra.gmra.mxu0 %vm459_vm0, %v435_v32 }
  0x63   : > { %1302 = vmatpush3.msra.mxu1 %v597_v8  ;;  %1308 = vmatprep.mubr.msk.bf16.mxu0 %vm1639_vm5, %v1638_v4 }
  0x64   : > { %1307 = vmatpush3.bf16.msra.mxu0 %v737_v42 }
 0x120   : > { %v1298_v9 = vpop.f32.mrf.mxu1 }
 0x121   : > { %v594_v13 = vadd.f32 %v1298_v9, %v1219_v10 }
 0x122   : > { %v588_v11 = vpop.f32.mrf.mxu1  ;;  %v497_v44 = vpop.f32.mrf.mxu0 }
 0x123   : > { %v589_v12 = vadd.f32 %v1219_v10, %v588_v11  ;;  %v498_v45 = vadd.f32 %v1215_v43, %v497_v44 }
 0x124   : > { %v1286_v46 = vpop.f32.mrf.mxu0 }
 0x125   : > { %1303 = vmatprep.mubr.msk.f32.mxu1 %vm599_vm1, %v589_v12  ;;  %v1251_v47 = vpack.c.bf16 %v498_v45, %v498_v45 }
 0x126   : > { %1304 = vmatmul.mubr.msk.f32.vlgmr.msra.gmra.mxu1 %vm599_vm1, %v594_v13  ;;  %v500_v48 = vpop.f32.mrf.mxu0 }
 0x127   : > { %791 = vst.msk [vmem:[#allocation2] sm:$0xf] %vm790_vm9, %v1251_v47  ;;  %v501_v49 = vadd.f32 %v1215_v43, %v500_v48 }
 0x128   : > { %v1287_v50 = vpop.f32.mrf.mxu0 }
 0x129   : > { %v1252_v51 = vpack.c.bf16 %v501_v49, %v501_v49 }
 0x12b   : > { %792 = vst.msk [vmem:[#allocation2 + $0x4] sm:$0xf] %vm790_vm9, %v1252_v51 }
 0x1e6   : > { %v1305_v14 = vpop.f32.mrf.mxu1 }
 0x1e7   : > { %v687_v17 = vsel %vm683_vm2, %v1305_v14, -inf }
 0x1e8   : > { %v672_v15 = vpop.f32.mrf.mxu1 }
 0x1e9   : > { %v684_v16 = vsel %vm683_vm2, %v672_v15, -inf }
 0x1ea   : > { %685 = vmax.xlane.f32.xlu0 %v684_v16 }
 0x1ee   : > { %688 = vmax.xlane.f32.xlu0 %v687_v17 }
 0x273   : > { %v686_v20 = vpop.xlane.xlu0 %685 }
 0x274   : > { %vm690_vm3 = vcmp.eq.f32.partialorder %v672_v15, %v686_v20 }
 0x275   : > { %v692_v21 = vsel %vm690_vm3, %v1875_v19, 4 }
 0x276   : > { %v694_v22 = vsel %vm683_vm2, %v692_v21, 2147483647 }
 0x277   : > { %v689_v23 = vpop.xlane.xlu0 %688  ;;  %v696_v24 = vshra.s32 %v694_v22, 16  ;;  %v695_v33 = vand.u32 65535, %v694_v22 }
 0x278   : > { %vm691_vm4 = vcmp.eq.f32.partialorder %v1305_v14, %v689_v23 }
 0x279   : > { %v693_v25 = vsel %vm691_vm4, %v1875_v19, 4  ;;  %v698_v26 = vcvt.s32.f32 %v696_v24  ;;  %v697_v35 = vcvt.s32.f32 %v695_v33 }
 0x27a   : > { %v709_v27 = vsel %vm683_vm2, %v693_v25, 2147483647 }
 0x27b   : > { %699 = vmin.xlane.f32.xlu1 %v698_v26  ;;  %v711_v28 = vshra.s32 %v709_v27, 16  ;;  %v710_v36 = vand.u32 65535, %v709_v27 }
 0x27d   : > { %v713_v29 = vcvt.s32.f32 %v711_v28  ;;  %v712_v39 = vcvt.s32.f32 %v710_v36 }
 0x27f   : > { %714 = vmin.xlane.f32.xlu1 %v713_v29 }
 0x304   : > { %v700_v34 = vpop.xlane.xlu1 %699 }
 0x305   : > { %vm701_vm6 = vcmp.eq.f32.partialorder %v698_v26, %v700_v34  ;;  %v706_v52 = vcvt.f32.s32 %v700_v34 }
 0x306   : > { %v702_v37 = vsel %vm701_vm6, %v697_v35, inf }
 0x307   : > { %703 = vmin.xlane.f32.xlu0 %v702_v37  ;;  %v707_v54 = vshll.u32 %v706_v52, 16 }
 0x308   : > { %v715_v38 = vpop.xlane.xlu1 %714 }
 0x309   : > { %vm716_vm7 = vcmp.eq.f32.partialorder %v713_v29, %v715_v38  ;;  %v721_v55 = vcvt.f32.s32 %v715_v38 }
 0x30a   : > { %v717_v40 = vsel %vm716_vm7, %v712_v39, inf }
 0x30b   : > { %718 = vmin.xlane.f32.xlu1 %v717_v40  ;;  %v722_v59 = vshll.u32 %v721_v55, 16 }
 0x31c   : > { %795 = vrot.lane.b32.xlu1 %v1252_v51, %s1640_s11 }
 0x31d   : > { %793 = vrot.lane.b32.xlu0 %v1251_v47, %s1640_s11 }
 0x320   : > { %810 = vrot.lane.b32.xlu1 %v1251_v47, %s1642_s25 }
 0x321   : > { %819 = vrot.lane.b32.xlu0 %v1251_v47, %s1641_s12 }
 0x324   : > { %812 = vrot.lane.b32.xlu1 %v1252_v51, %s1642_s25 }
 0x328   : > { %821 = vrot.lane.b32.xlu1 %v1252_v51, %s1641_s12 }
 0x390   : > { %v704_v53 = vpop.xlane.xlu0 %703 }
 0x391   : > { %v705_v56 = vcvt.f32.s32 %v704_v53 }
 0x393   : > { %v708_v57 = vadd.s32 %v707_v54, %v705_v56 }
 0x394   : > { %v719_v58 = vpop.xlane.xlu1 %718  ;;  %v794_v2 = vpop.permute.xlu0 %793 }
 0x395   : > { %v720_v60 = vcvt.f32.s32 %v719_v58  ;;  %vm724_vm10 = vcmp.eq.s32.totalorder %v1875_v19, %v708_v57  ;;  %799 = vst.msk [vmem:[#allocation3] sm:$0xf] %vm790_vm9, %v794_v2 }
 0x396   : > { %v1224_v62 = vsel %vm724_vm10, 1.0, %v1638_v4 }
 0x397   : > { %v723_v61 = vadd.s32 %v722_v59, %v720_v60 }
 0x398   : > { %v796_v1 = vpop.permute.xlu1 %795  ;;  %v820_v7 = vpop.permute.xlu0 %819 }
 0x399   : > { %vm725_vm11 = vcmp.eq.s32.totalorder %v1875_v19, %v723_v61  ;;  %800 = vst.msk [vmem:[#allocation3 + $0x4] sm:$0xf] %vm790_vm9, %v796_v1  ;;  %826 = vst.msk [vmem:[#allocation3 + $0x8] sm:$0xf] %vm790_vm9, %v820_v7 }
 0x39a   : > { %v1225_v63 = vsel %vm725_vm11, 1.0, %v1638_v4 }
 0x39b   : > { %v730_v0 = vpack.c.bf16 %v1225_v63, %v1224_v62 }
 0x39c   : > { %v811_v5 = vpop.permute.xlu1 %810 }
 0x39d   : > { %1309 = vmatmul.mubr.msk.bf16.vlgmr.msra.gmra.mxu0 %vm683_vm2, %v730_v0  ;;  %817 = vst.msk [vmem:[#allocation2 + $0x8] sm:$0xf] %vm790_vm9, %v811_v5 }
 0x3a0   : > { %v813_v8 = vpop.permute.xlu1 %812 }
 0x3a1   : > { %818 = vst.msk [vmem:[#allocation2 + $0xc] sm:$0xf] %vm790_vm9, %v813_v8 }
 0x3a4   : > { %v822_v9 = vpop.permute.xlu1 %821 }
 0x3a5   : > { %827 = vst.msk [vmem:[#allocation3 + $0xc] sm:$0xf] %vm790_vm9, %v822_v9 }
 0x45d   : > { %v773_v4 = vpop.f32.mrf.mxu0 }
 0x45e   : > { %v780_v10 = vmul.f32 %v773_v4, %v1851_v3 }
 0x45f   : > { %v1310_v11 = vpop.f32.mrf.mxu0 }
 0x460   : > { %v1253_v12 = vpack.c.bf16 %v780_v10, %v780_v10 }
 0x461   : > { %v776_v13 = vpop.f32.mrf.mxu0 }
 0x462   : > { %808 = vst.msk [vmem:[#allocation4] sm:$0xf] %vm790_vm9, %v1253_v12  ;;  %v781_v14 = vmul.f32 %v776_v13, %v1863_v6  ;;  %828 = vrot.lane.b32.xlu0 %v1253_v12, %s1642_s25 }
 0x463   : > { %v1311_v15 = vpop.f32.mrf.mxu0 }
 0x464   : > { %v1254_v16 = vpack.c.bf16 %v781_v14, %v781_v14 }
 0x466   : > { %809 = vst.msk [vmem:[#allocation4 + $0x4] sm:$0xf] %vm790_vm9, %v1254_v16  ;;  %830 = vrot.lane.b32.xlu1 %v1254_v16, %s1642_s25 }
 0x4d4   : > { %v829_v17 = vpop.permute.xlu0 %828 }
 0x4d5   : > { %835 = vst.msk [vmem:[#allocation4 + $0x8] sm:$0xf] %vm790_vm9, %v829_v17 }
 0x4d8   : > { %v831_v18 = vpop.permute.xlu1 %830 }
 0x4d9   : > { %836 = vst.msk [vmem:[#allocation4 + $0xc] sm:$0xf] %vm790_vm9, %v831_v18 }
 0x4da PF: > { %s1255_s2 = sshll.u32 %s1617_s16, 3  ;;  %v1643_v3 = vmov 0.0   ;;  %vm866_vm12 = vcmask 130048   ;;  %vm1644_vm13 = vmmov 0   ;;  %v854_v21 = vld [vmem:[%s2017_s9] sm:$0xff]  ;;  %v855_v25 = vld [vmem:[%s2017_s9 + $0x8] sm:$0xff] }
 0x4db   : > { %1312 = vmatprep.subr.bf16.mxu0 %v1643_v3  ;;  %1314 = vmatprep.mubr.msk.bf16.mxu0 %vm1644_vm13, %v1643_v3  ;;  %s845_s4 = scalar_lea.vmem [#allocation3], %s1255_s2  ;;  %s841_s19 = scalar_lea.vmem [#allocation2], %s1255_s2  ;;  %v1446_v43 = vld [vmem:[%s1837_s15] sm:$0xff]   ;;  %v1038_v55 = vld [vmem:[#allocation5] sm:$0xff]  ;;  %vm1042_vm14 = vcmask 261120   ;;  %v1039_v59 = vld [vmem:[#allocation5 + $0x8] sm:$0xff] }
 0x4dc   : > { %v1443_v6 = vld [vmem:[%s845_s4] sm:$0xff]   ;;  %1318 = vmatprep.subr.bf16.mxu1 %v1643_v3  ;;  %1320 = vmatprep.mubr.msk.bf16.mxu1 %vm1644_vm13, %v1643_v3  ;;  %s849_s30 = scalar_lea.vmem [#allocation4], %s1255_s2  ;;  %p1242_p13 = scmp.ne.s32.totalorder %s1617_s16, 1 }
 0x4dd   : > { %v871_v19 = vsel %vm866_vm12, %v1443_v6, 0  ;;  %v1444_v20 = vld [vmem:[%s841_s19] sm:$0xff]  }
 0x4de   : > { %1313 = vmatpush3.bf16.xpose.msra.mxu0 %v871_v19 }
 0x4e0   : > { %v1445_v31 = vld [vmem:[%s849_s30] sm:$0xff]  }
 0x4e1   : > { %1319 = vmatpush3.bf16.msra.mxu1 %v1445_v31 }
 0x4e2   : > { %1324 = vmatprep.subr.bf16.mxu1 %v1643_v3 }
 0x4e5   : > { %1315 = vmatmul.mubr.msk.bf16.vlgmr.msra.gmra.mxu0 %vm866_vm12, %v1444_v20 }
 0x5a5   : > { %v907_v22 = vpop.f32.mrf.mxu0 }
 0x5a6   : > { %v908_v23 = vadd.f32 %v907_v22, %v854_v21 }
 0x5a7   : > { %v1316_v24 = vpop.f32.mrf.mxu0 }
 0x5a8   : > { %v914_v26 = vsel %vm866_vm12, %v908_v23, -inf }
 0x5a9   : > { %915 = vmax.xlane.f32.xlu0 %v914_v26  ;;  %v910_v27 = vpop.f32.mrf.mxu0 }
 0x5aa   : > { %v911_v28 = vadd.f32 %v910_v27, %v855_v25 }
 0x5ab   : > { %v1317_v29 = vpop.f32.mrf.mxu0 }
 0x5ac   : > { %v917_v30 = vsel %vm866_vm12, %v911_v28, -inf }
 0x5ad   : > { %918 = vmax.xlane.f32.xlu0 %v917_v30 }
 0x632   : > { %v916_v32 = vpop.xlane.xlu0 %915 }
 0x633   : > { %v920_v33 = vsub.f32 %v908_v23, %v916_v32 }
 0x635   : > { %v922_v34 = vmul.f32 1.442695, %v920_v33 }
 0x636   : > { %v919_v35 = vpop.xlane.xlu0 %918 }
 0x637   : > { %1447 = vpow2.f32 %v922_v34  ;;  %v921_v36 = vsub.f32 %v911_v28, %v919_v35 }
 0x639   : > { %v924_v37 = vmul.f32 1.442695, %v921_v36 }
 0x63b   : > { %1449 = vpow2.f32 %v924_v37 }
 0x644   : > { %v1448_v38 = vpop.eup %1447 }
 0x645   : > { %v926_v39 = vsel %vm866_vm12, %v1448_v38, 0.0 }
 0x646   : > { %927 = vadd.xlane.f32.xlu1 %v926_v39 }
 0x648   : > { %v1450_v40 = vpop.eup %1449 }
 0x649   : > { %v929_v41 = vsel %vm866_vm12, %v1450_v40, 0.0  ;;  %v932_v42 = vpack.c.bf16 %v1450_v40, %v1448_v38 }
 0x64a   : > { %930 = vadd.xlane.f32.xlu1 %v929_v41 }
 0x64b   : > { %1321 = vmatmul.mubr.msk.bf16.vlgmr.msra.gmra.mxu1 %vm866_vm12, %v932_v42 }
 0x64c   : > { %1326 = vmatprep.mubr.msk.bf16.mxu1 %vm1644_vm13, %v1643_v3  ;;  %1325 = vmatpush3.bf16.msra.mxu1 %v1446_v43 }
 0x6cf   : > { %v928_v44 = vpop.xlane.xlu1 %927 }
 0x6d0   : > { %1451 = vrcp.f32 %v928_v44 }
 0x6d3   : > { %v931_v45 = vpop.xlane.xlu1 %930 }
 0x6d4   : > { %1453 = vrcp.f32 %v931_v45 }
 0x6dd   : > { %v1452_v48 = vpop.eup %1451 }
 0x6e1   : > { %v1454_v49 = vpop.eup %1453 }
 0x70b   : > { %v976_v46 = vpop.f32.mrf.mxu1 }
 0x70c   : > { %v985_v51 = vmul.f32 %v1452_v48, %v976_v46 }
 0x70d   : > { %v1322_v47 = vpop.f32.mrf.mxu1 }
 0x70f   : > { %v979_v50 = vpop.f32.mrf.mxu1 }
 0x710   : > { %v986_v52 = vmul.f32 %v1454_v49, %v979_v50 }
 0x711   : > { %v1323_v53 = vpop.f32.mrf.mxu1 }
 0x712   : > { %v987_v54 = vpack.c.bf16 %v986_v52, %v985_v51 }
 0x714   : > { %1327 = vmatmul.mubr.msk.bf16.vlgmr.msra.gmra.mxu1 %vm866_vm12, %v987_v54 }
 0x7d4   : > { %v1031_v56 = vpop.f32.mrf.mxu1 }
 0x7d5   : > { %v1040_v57 = vadd.f32 %v1038_v55, %v1031_v56 }
 0x7d6   : > { %v1328_v58 = vpop.f32.mrf.mxu1 }
 0x7d7   : > { %1043 = vst.msk [vmem:[#allocation5] sm:$0xff] %vm1042_vm14, %v1040_v57  ;;  %1048 = sbr.rel (%p1242_p13) target bundleno = 2022 (0x7e6), region = 80 }
 0x7d8   : > { %v1034_v60 = vpop.f32.mrf.mxu1 }
 0x7d9   : > { %v1041_v61 = vadd.f32 %v1039_v59, %v1034_v60 }
 0x7da   : > { %v1329_v62 = vpop.f32.mrf.mxu1 }
 0x7db   : > { %1044 = vst.msk [vmem:[#allocation5 + $0x8] sm:$0xff] %vm1042_vm14, %v1041_v61 }
 0x7dc   : > { %v1243_v0 = vld [vmem:[%s2016_s8] ss:$0 sm:$0xff] }
 0x7de   : > { %v1049_v63 = vld [vmem:[#allocation5] sm:$0xff] }
 0x7df   : > { %v1058_v2 = vadd.f32 %v1243_v0, %v1049_v63 }
 0x7e1   : > { %1060 = vst.msk [vmem:[%s1839_s21] sm:$0xff] %vm1042_vm14, %v1058_v2 }
 0x7e2   : > { %v1050_v1 = vld [vmem:[#allocation5 + $0x8] sm:$0xff] }
 0x7e3   : > { %v1059_v5 = vadd.f32 %v1243_v0, %v1050_v1 }
 0x7e5   : > { %1061 = vst.msk [vmem:[%s1839_s21 + $0x8] sm:$0xff] %vm1042_vm14, %v1059_v5 }
 0x7e6 PF: > { %s1258_s16 = sshll.u32 %s1621_s17, 8  ;;  %s1076_s25 = sshll.u32 %s1839_s21, 4  ;;  %s1953_s25 = int_to_ptr.vmem [resolvable:$true] %s1076_s25 }
 0x7e7   : > { %s1950_s12 = scalar_lea.hbm %s2018_s10, %s1258_s16  ;;  %s2045_s2 = sand.u32 1, %s1609_s14  }
 0x7e8   : > { %s1957_s4 = scalar_lea.sflag [#allocation8], %s2045_s2  ;;  %s1533_s19 = scalar_lea.vmem %s1953_s25, 256 }
 0x7e9   : > { %p1534_p0 = scmp.ne.s32.totalorder %s1953_s25, %s1533_s19  ;;  %p2046_p1 = scmp.ne.s32.totalorder %s2034_s26, 0 }
 0x7ea   : > { %s1645_s17 = smov [#allocation12]  }
 0x7eb   : > { %p1535_p6 = pnand %p1534_p0, %p2046_p1  ;;  %s1537_s28 = sshll.u32 %s1645_s17, 4  ;;  %s1538_s28 = int_to_ptr.vmem [resolvable:$false] %s1537_s28 }
 0x7ec   : > { %s1539_s22 = scalar_lea.vmem %s1538_s28, 512  ;;  %p1540_p8 = scmp.lt.s32.totalorder %s1953_s25, %s1538_s28 }
 0x7ed   : > { %p1536_p7 = pneg %p1535_p6  ;;  %p1541_p11 = scmp.lt.s32.totalorder %s1539_s22, %s1533_s19 }
 0x7ef   : > { %p1542_p12 = por %p1541_p11, %p1540_p8 }
 0x7f1   : > { %p1543_p2 = pnand %p1542_p12, %p1536_p7 }
 0x7f3   : > { %1546 = shalt.err (!%p1543_p2)
}
 0x7f4   : > { %s1547_s21 = scalar_lea.hbm %s1950_s12, 256  ;;  %s1551_s30 = scalar_lea.hbm %s2018_s10, 512 }
 0x7f5   : > { %p1548_p4 = scmp.ne.s32.totalorder %s1950_s12, %s1547_s21  ;;  %p1552_p9 = scmp.lt.s32.totalorder %s1950_s12, %s2018_s10 }
 0x7f6   : > { %p1553_p10 = scmp.lt.s32.totalorder %s1551_s30, %s1547_s21 }
 0x7f7   : > { %p1549_p5 = pnand %p1548_p4, %p2046_p1 }
 0x7f8   : > { %p1554_p13 = por %p1553_p10, %p1552_p9 }
 0x7f9   : > { %p1550_p3 = pneg %p1549_p5 }
 0x7fb   : > { %p1555_p0 = pnand %p1554_p13, %p1550_p3 }
 0x7fd   : > { %1558 = shalt.err (!%p1555_p0)
}
 0x7fe   : > { %s1646_s16 = smov 128   ;;  %s1647_s18 = smov 8  }
 0x7ff   : > { %1342 = dma.vmem_to_hbm [thread:$0]  (%p2046_p1), %s1953_s25, 256, %s1950_s12, %s1957_s4, %s1646_s16, %s1646_s16, %s1647_s18  }
 0x800 PF: > { %p1364_p6 = scmp.ge.s32.totalorder %s1633_s20, 2  ;;  %s1091_s11 = sand.u32 1, %s1605_s13  }
 0x801   : > { %p2047_p7 = scmp.ne.s32.totalorder %s2036_s27, 0  ;;  %s1092_s2 = scalar_lea.sflag [#allocation8], %s1091_s11 }
 0x803   : > { %p1355_p8 = pnand %p1364_p6, %p2047_p7 }
 0x805   : > { %p1356_p11 = pneg %p1355_p8 }
 0x807   : > { %1600 = dma.done.wait (%p1356_p11), %s1092_s2, 256  }
 0x808   : > { %1602 = vsyncadd (%p1356_p11), %s1092_s2, 4294967040  ;;  %s25_s20 = sadd.s32 1, %s1633_s20   ;;  %s2048_s19 = sld [smem:[#allocation16_spill]] }
 0x809   : > { %p22_p12 = scmp.ge.s32.totalorder %s25_s20, 6   ;;  %s2049_s15 = sld [smem:[#allocation21_spill]] }
 0x80a   : > { %s2050_s16 = sld [smem:[#allocation17_spill]]  ;;  %s2054_s13 = smov %s1609_s14 }
 0x80b   : > { %s2051_s17 = sld [smem:[#allocation18_spill]] }
 0x80c   : > { %s2052_s18 = sld [smem:[#allocation19_spill]] }
 0x80d   : > { %s2053_s26 = sld [smem:[#allocation20_spill]] }
 0x80e   : > { %s2055_s14 = smov %s2048_s19 }
 0x80f   :  { %24 = sbr.rel (!%p22_p12) target bundleno = 10 (0xa), region = 125 }
 0x813   : > { %s2056_s19 = smov %s2053_s26 }
 0x814   :  { %1097 = vsyncpa [#allocation7], 1 }
 0x815   :  { %1099 = vsyncpa [#allocation7 + $0x1], 1 }
 0x816   :  { %1100 = vsyncpa [#allocation10], 1 }
 0x817   :  { %1101 = vsyncpa [#allocation8], 1 }
 0x818   :  { %1103 = vsyncpa [#allocation8 + $0x1], 1 }

</bundles_post_ra>
